<compile_context>
chip_gen: v5e
topology: v5e:2x2
jax: 0.10.0
libtpu: 0.0.40
codegen_flags: <defaults>
</compile_context>

<pallas_src>
import math
import functools

import jax
import jax.numpy as jnp
from jax.experimental import pallas as pl
from jax.experimental.pallas import tpu as pltpu

# ---- model hyper-parameters (small, consistent with the module) -------------
INPUT_SIZE = 16     # F  (Linear maps hidden -> input_size)
HIDDEN = 32         # H  (4H = 128 -> one full lane width)
NUM_LAYERS = 2
OUTPUT_SIZE = 10    # kept for parity with the ctor; unused by forward()
BATCH = 2


def _vmem_spec():
    # whole array resident in VMEM (everything here is < 100 KiB)
    return pl.BlockSpec(memory_space=pltpu.MemorySpace.VMEM)


def _round8(n):
    return -(-n // 8) * 8


# --------------------------- fused Decoder kernel -----------------------------
def make_decoder_kernel(F, H, L, offs):
    G = 4 * H  # 128 lanes

    def kernel(x_ref, s_ref, w_ref, pred_ref, s_out_ref):
        # x_ref:     (B, F)
        # s_ref:     (B, 2*L*H) packed state [h_0..h_{L-1} | c_0..c_{L-1}]
        # w_ref:     (rows, 4H) packed weight slab (static 8-aligned offsets)
        # pred_ref:  (B, 4H)    prediction, zero-padded to 128 lanes
        # s_out_ref: (B, 2*L*H) packed new state (aliases s_ref's HBM buffer)
        x = x_ref[...]
        hs, cs = [], []
        for l in range(L):                       # static Python loop (L=2)
            din = F if l == 0 else H
            h_prev = s_ref[:, l * H:(l + 1) * H]
            c_prev = s_ref[:, (L + l) * H:(L + l + 1) * H]

            W = w_ref[offs[f"w{l}"]:offs[f"w{l}"] + din + H, :]   # (Din+H, 4H)
            b = w_ref[offs[f"b{l}"]:offs[f"b{l}"] + 1, :]          # (1, 4H)

            # single fused matmul per layer: [x | h_prev] @ [w_ih.T ; w_hh.T]
            xin = jnp.concatenate([x, h_prev], axis=1)             # (B, Din+H)
            gates = jnp.dot(xin, W,
                            preferred_element_type=jnp.float32) + b  # (B, 4H)

            # whole-vreg transcendentals (one EUP pass each), then slice i/f/g/o
            sig = jax.nn.sigmoid(gates)
            tnh = jnp.tanh(gates)
            i = sig[:, 0:H]
            f = sig[:, H:2 * H]
            g = tnh[:, 2 * H:3 * H]
            o = sig[:, 3 * H:4 * H]

            c_new = f * c_prev + i * g
            h_new = o * jnp.tanh(c_new)
            hs.append(h_new)
            cs.append(c_new)
            x = h_new                            # feeds the next layer

        # one unmasked 128-lane store for the whole state slab
        s_out_ref[...] = jnp.concatenate(hs + cs, axis=1)

        # Linear(hidden -> input_size); weight/bias zero-padded to 128 lanes so
        # the prediction store is a full-lane (unmasked) write.
        Wl = w_ref[offs["wl"]:offs["wl"] + H, :]          # (H, 4H)
        bl = w_ref[offs["bl"]:offs["bl"] + 1, :]          # (1, 4H)
        pred_ref[...] = (jnp.dot(x, Wl, preferred_element_type=jnp.float32)
                         + bl)

    return kernel


# --------------------------- parameters & packing ------------------------------
def init_params(key):
    keys = iter(jax.random.split(key, 4 * NUM_LAYERS + 2))
    params = {}

    # LSTM: per layer weight_ih (4H, Din), weight_hh (4H, H), b_ih, b_hh (4H,)
    # gate order [i, f, g, o] (PyTorch)
    k_lstm = 1.0 / math.sqrt(HIDDEN)
    lstm = []
    in_size = INPUT_SIZE
    for _ in range(NUM_LAYERS):
        w_ih = jax.random.uniform(next(keys), (4 * HIDDEN, in_size),
                                  jnp.float32, -k_lstm, k_lstm)
        w_hh = jax.random.uniform(next(keys), (4 * HIDDEN, HIDDEN),
                                  jnp.float32, -k_lstm, k_lstm)
        b_ih = jax.random.uniform(next(keys), (4 * HIDDEN,),
                                  jnp.float32, -k_lstm, k_lstm)
        b_hh = jax.random.uniform(next(keys), (4 * HIDDEN,),
                                  jnp.float32, -k_lstm, k_lstm)
        lstm.append((w_ih, w_hh, b_ih, b_hh))
        in_size = HIDDEN
    params['lstm'] = lstm

    # Linear(hidden_size, input_size)
    bound = 1.0 / math.sqrt(HIDDEN)
    w_lin = jax.random.uniform(next(keys), (INPUT_SIZE, HIDDEN),
                               jnp.float32, -bound, bound)
    b_lin = jax.random.uniform(next(keys), (INPUT_SIZE,),
                               jnp.float32, -bound, bound)
    params['linear'] = (w_lin, b_lin)
    return params


def pack_weights(params, F, H, L):
    """One-time packing: single lane-dense (rows, 4H) slab, 8-row-aligned
    sections, pre-transposed weights, pre-fused b_ih+b_hh."""
    G = 4 * H
    blocks, offs, cur = [], {}, 0

    def add(name, block):
        nonlocal cur
        r, c = block.shape
        r_pad = _round8(r)
        padded = jnp.zeros((r_pad, G), jnp.float32).at[:r, :c].set(block)
        blocks.append(padded)
        offs[name] = cur
        cur += r_pad

    for l, (w_ih, w_hh, b_ih, b_hh) in enumerate(params['lstm']):
        add(f"w{l}", jnp.concatenate([w_ih.T, w_hh.T], axis=0))  # (Din+H, 4H)
        add(f"b{l}", (b_ih + b_hh)[None, :])                     # (1, 4H)
    w_lin, b_lin = params['linear']
    add("wl", w_lin.T)                                           # (H, F) -> pad
    add("bl", b_lin[None, :])                                    # (1, F) -> pad

    slab = jnp.concatenate(blocks, axis=0)                       # (rows, 4H)
    return slab, offs


# --------------------------------- forward ------------------------------------
def make_decoder_fn(slab, offs, F, H, L):
    kernel = make_decoder_kernel(F, H, L, offs)

    @jax.jit
    def forward(x, h, c):
        # x: (B, F)   h, c: (L, B, H)  (PyTorch layout)
        B = x.shape[0]
        # pack state lane-dense: [h_0..h_{L-1} | c_0..c_{L-1}] -> (B, 2*L*H)
        s_in = jnp.concatenate([h[l] for l in range(L)]
                               + [c[l] for l in range(L)], axis=1)
        pred_pad, s_out = pl.pallas_call(
            kernel,
            out_shape=(jax.ShapeDtypeStruct((B, 4 * H), jnp.float32),
                       jax.ShapeDtypeStruct((B, 2 * L * H), jnp.float32)),
            in_specs=[_vmem_spec(), _vmem_spec(), _vmem_spec()],
            out_specs=(_vmem_spec(), _vmem_spec()),
            input_output_aliases={1: 1},   # donate packed state buffer
        )(x, s_in, slab)

        pred = pred_pad[:, :F]
        h_new = jnp.stack([s_out[:, l * H:(l + 1) * H] for l in range(L)],
                          axis=0)
        c_new = jnp.stack([s_out[:, (L + l) * H:(L + l + 1) * H]
                           for l in range(L)], axis=0)
        return pred, h_new, c_new

    return forward


# ------------------------------ pure-JAX reference ----------------------------
def reference_forward(params, x, h, c):
    h_out, c_out = [], []
    inp = x
    for l, (w_ih, w_hh, b_ih, b_hh) in enumerate(params['lstm']):
        gates = inp @ w_ih.T + h[l] @ w_hh.T + b_ih + b_hh
        i, f, g, o = jnp.split(gates, 4, axis=1)
        i, f, o = jax.nn.sigmoid(i), jax.nn.sigmoid(f), jax.nn.sigmoid(o)
        g = jnp.tanh(g)
        c_new = f * c[l] + i * g
        h_new = o * jnp.tanh(c_new)
        h_out.append(h_new)
        c_out.append(c_new)
        inp = h_new
    w_lin, b_lin = params['linear']
    pred = inp @ w_lin.T + b_lin
    return pred, jnp.stack(h_out), jnp.stack(c_out)


if __name__ == "__main__":
    key = jax.random.PRNGKey(0)
    pkey, xkey, hkey, ckey = jax.random.split(key, 4)
    params = init_params(pkey)
    slab, offs = pack_weights(params, INPUT_SIZE, HIDDEN, NUM_LAYERS)

    x = jax.random.normal(xkey, (BATCH, INPUT_SIZE), jnp.float32)
    h0 = jax.random.normal(hkey, (NUM_LAYERS, BATCH, HIDDEN), jnp.float32)
    c0 = jax.random.normal(ckey, (NUM_LAYERS, BATCH, HIDDEN), jnp.float32)

    fwd = make_decoder_fn(slab, offs, INPUT_SIZE, HIDDEN, NUM_LAYERS)
    pred, h1, c1 = fwd(x, h0, c0)
    jax.block_until_ready((pred, h1, c1))

    assert pred.shape == (BATCH, INPUT_SIZE) and pred.dtype == jnp.float32
    assert h1.shape == (NUM_LAYERS, BATCH, HIDDEN)
    assert c1.shape == (NUM_LAYERS, BATCH, HIDDEN)

    # numerical check vs. pure-JAX reference
    pred_r, h_r, c_r = reference_forward(params, x, h0, c0)
    assert jnp.allclose(pred, pred_r, atol=1e-3, rtol=1e-3)
    assert jnp.allclose(h1, h_r, atol=1e-3, rtol=1e-3)
    assert jnp.allclose(c1, c_r, atol=1e-3, rtol=1e-3)
    print("KERNEL_OK")
</pallas_src>

<mosaic_0001>
module attributes {stable_mosaic.version = 11 : i64} {
  func.func @kernel(%arg0: memref<2x16xf32, #tpu.memory_space<vmem>>, %arg1: memref<2x128xf32, #tpu.memory_space<vmem>>, %arg2: memref<168x128xf32, #tpu.memory_space<vmem>>, %arg3: memref<2x128xf32, #tpu.memory_space<vmem>>, %arg4: memref<2x128xf32, #tpu.memory_space<vmem>>) attributes {dimension_semantics = [], scalar_prefetch = 0 : i64, scratch_operands = 0 : i64, tpu.core_type = #tpu.core_type<tc>} {
    %c0 = arith.constant 0 : index
    %c0_0 = arith.constant 0 : index
    %0 = vector.load %arg0[%c0, %c0_0] : memref<2x16xf32, #tpu.memory_space<vmem>>, vector<2x16xf32>
    %c0_1 = arith.constant 0 : index
    %c0_2 = arith.constant 0 : index
    %1 = vector.load %arg1[%c0_1, %c0_2] : memref<2x128xf32, #tpu.memory_space<vmem>>, vector<2x32xf32>
    %c0_3 = arith.constant 0 : index
    %c64 = arith.constant 64 : index
    %2 = vector.load %arg1[%c0_3, %c64] : memref<2x128xf32, #tpu.memory_space<vmem>>, vector<2x32xf32>
    %c0_4 = arith.constant 0 : index
    %c0_5 = arith.constant 0 : index
    %3 = vector.load %arg2[%c0_4, %c0_5] : memref<168x128xf32, #tpu.memory_space<vmem>>, vector<48x128xf32>
    %c48 = arith.constant 48 : index
    %c0_6 = arith.constant 0 : index
    %4 = vector.load %arg2[%c48, %c0_6] : memref<168x128xf32, #tpu.memory_space<vmem>>, vector<1x128xf32>
    %5 = tpu.concatenate %0, %1 in 1 : vector<2x16xf32>, vector<2x32xf32> -> vector<2x48xf32>
    %cst = arith.constant dense<0.000000e+00> : vector<2x128xf32>
    %6 = tpu.matmul %5, %3, %cst {dimension_numbers = #tpu.dot_dimension_numbers<[1], [0], [0], [1], [0, 0, 1, 1], [], []>} : vector<2x48xf32>, vector<48x128xf32>, vector<2x128xf32> -> vector<2x128xf32>
    %7 = vector.broadcast %4 : vector<1x128xf32> to vector<2x128xf32>
    %8 = arith.addf %6, %7 : vector<2x128xf32>
    %9 = arith.negf %8 : vector<2x128xf32>
    %10 = math.exp %9 : vector<2x128xf32>
    %cst_7 = arith.constant 1.000000e+00 : f32
    %11 = vector.broadcast %cst_7 : f32 to vector<2x128xf32>
    %12 = arith.addf %11, %10 : vector<2x128xf32>
    %13 = arith.divf %11, %12 : vector<2x128xf32>
    %14 = math.tanh %8 : vector<2x128xf32>
    %15 = vector.extract_strided_slice %13 {offsets = [0, 0], sizes = [2, 32], strides = [1, 1]} : vector<2x128xf32> to vector<2x32xf32>
    %16 = vector.extract_strided_slice %13 {offsets = [0, 32], sizes = [2, 32], strides = [1, 1]} : vector<2x128xf32> to vector<2x32xf32>
    %17 = vector.extract_strided_slice %14 {offsets = [0, 64], sizes = [2, 32], strides = [1, 1]} : vector<2x128xf32> to vector<2x32xf32>
    %18 = vector.extract_strided_slice %13 {offsets = [0, 96], sizes = [2, 32], strides = [1, 1]} : vector<2x128xf32> to vector<2x32xf32>
    %19 = arith.mulf %16, %2 : vector<2x32xf32>
    %20 = arith.mulf %15, %17 : vector<2x32xf32>
    %21 = arith.addf %19, %20 : vector<2x32xf32>
    %22 = math.tanh %21 : vector<2x32xf32>
    %23 = arith.mulf %18, %22 : vector<2x32xf32>
    %c0_8 = arith.constant 0 : index
    %c32 = arith.constant 32 : index
    %24 = vector.load %arg1[%c0_8, %c32] : memref<2x128xf32, #tpu.memory_space<vmem>>, vector<2x32xf32>
    %c0_9 = arith.constant 0 : index
    %c96 = arith.constant 96 : index
    %25 = vector.load %arg1[%c0_9, %c96] : memref<2x128xf32, #tpu.memory_space<vmem>>, vector<2x32xf32>
    %c56 = arith.constant 56 : index
    %c0_10 = arith.constant 0 : index
    %26 = vector.load %arg2[%c56, %c0_10] : memref<168x128xf32, #tpu.memory_space<vmem>>, vector<64x128xf32>
    %c120 = arith.constant 120 : index
    %c0_11 = arith.constant 0 : index
    %27 = vector.load %arg2[%c120, %c0_11] : memref<168x128xf32, #tpu.memory_space<vmem>>, vector<1x128xf32>
    %28 = tpu.concatenate %23, %24 in 1 : vector<2x32xf32>, vector<2x32xf32> -> vector<2x64xf32>
    %cst_12 = arith.constant dense<0.000000e+00> : vector<2x128xf32>
    %29 = tpu.matmul %28, %26, %cst_12 {dimension_numbers = #tpu.dot_dimension_numbers<[1], [0], [0], [1], [0, 0, 1, 1], [], []>} : vector<2x64xf32>, vector<64x128xf32>, vector<2x128xf32> -> vector<2x128xf32>
    %30 = vector.broadcast %27 : vector<1x128xf32> to vector<2x128xf32>
    %31 = arith.addf %29, %30 : vector<2x128xf32>
    %32 = arith.negf %31 : vector<2x128xf32>
    %33 = math.exp %32 : vector<2x128xf32>
    %cst_13 = arith.constant 1.000000e+00 : f32
    %34 = vector.broadcast %cst_13 : f32 to vector<2x128xf32>
    %35 = arith.addf %34, %33 : vector<2x128xf32>
    %36 = arith.divf %34, %35 : vector<2x128xf32>
    %37 = math.tanh %31 : vector<2x128xf32>
    %38 = vector.extract_strided_slice %36 {offsets = [0, 0], sizes = [2, 32], strides = [1, 1]} : vector<2x128xf32> to vector<2x32xf32>
    %39 = vector.extract_strided_slice %36 {offsets = [0, 32], sizes = [2, 32], strides = [1, 1]} : vector<2x128xf32> to vector<2x32xf32>
    %40 = vector.extract_strided_slice %37 {offsets = [0, 64], sizes = [2, 32], strides = [1, 1]} : vector<2x128xf32> to vector<2x32xf32>
    %41 = vector.extract_strided_slice %36 {offsets = [0, 96], sizes = [2, 32], strides = [1, 1]} : vector<2x128xf32> to vector<2x32xf32>
    %42 = arith.mulf %39, %25 : vector<2x32xf32>
    %43 = arith.mulf %38, %40 : vector<2x32xf32>
    %44 = arith.addf %42, %43 : vector<2x32xf32>
    %45 = math.tanh %44 : vector<2x32xf32>
    %46 = arith.mulf %41, %45 : vector<2x32xf32>
    %47 = tpu.concatenate %23, %46, %21, %44 in 1 : vector<2x32xf32>, vector<2x32xf32>, vector<2x32xf32>, vector<2x32xf32> -> vector<2x128xf32>
    %c0_14 = arith.constant 0 : index
    %c0_15 = arith.constant 0 : index
    %48 = vector.load %arg4[%c0_14, %c0_15] : memref<2x128xf32, #tpu.memory_space<vmem>>, vector<2x128xf32>
    tpu.vector_store %arg4[%c0_14, %c0_15], %47 {strides = array<i32>} : memref<2x128xf32, #tpu.memory_space<vmem>>, vector<2x128xf32>,
    %c128 = arith.constant 128 : index
    %c0_16 = arith.constant 0 : index
    %49 = vector.load %arg2[%c128, %c0_16] : memref<168x128xf32, #tpu.memory_space<vmem>>, vector<32x128xf32>
    %c160 = arith.constant 160 : index
    %c0_17 = arith.constant 0 : index
    %50 = vector.load %arg2[%c160, %c0_17] : memref<168x128xf32, #tpu.memory_space<vmem>>, vector<1x128xf32>
    %cst_18 = arith.constant dense<0.000000e+00> : vector<2x128xf32>
    %51 = tpu.matmul %46, %49, %cst_18 {dimension_numbers = #tpu.dot_dimension_numbers<[1], [0], [0], [1], [0, 0, 1, 1], [], []>} : vector<2x32xf32>, vector<32x128xf32>, vector<2x128xf32> -> vector<2x128xf32>
    %52 = vector.broadcast %50 : vector<1x128xf32> to vector<2x128xf32>
    %53 = arith.addf %51, %52 : vector<2x128xf32>
    %c0_19 = arith.constant 0 : index
    %c0_20 = arith.constant 0 : index
    %54 = vector.load %arg3[%c0_19, %c0_20] : memref<2x128xf32, #tpu.memory_space<vmem>>, vector<2x128xf32>
    tpu.vector_store %arg3[%c0_19, %c0_20], %53 {strides = array<i32>} : memref<2x128xf32, #tpu.memory_space<vmem>>, vector<2x128xf32>,
    return
  }
}

</mosaic_0001>

<bundles_post_ra>
// kernel: forward.1
= control target key start
LH: loop header
LB: loop body
LE: loop exit
PB: predicated region body
PF: predicated region fallthrough
CT: control target
= control target key end

     0   :  { %10 = vsyncpa [#allocation3], 0  ;;  %s417_s0 = inlined_call_operand.vmem [shape: f32[2,16], index: 0, kind: input, shape index: {}]   ;;  %s418_s1 = inlined_call_operand.vmem [shape: f32[2,128], index: 1, kind: input, shape index: {}, may-alias: {1,4}]   ;;  %s419_s2 = inlined_call_operand.hbm [shape: f32[168,128], index: 2, kind: input, shape index: {}]   ;;  %s420_s3 = inlined_call_operand.hbm [shape: f32[2,128], index: 3, kind: output, shape index: {0}]   ;;  %s421_s4 = inlined_call_operand.vmem [shape: f32[2,128], index: 4, kind: output, shape index: {1}, may-alias: {1,4}]  }
   0x1   :  { %11 = vsyncpa [#allocation4], 0  ;;  %s20_s17 = sshll.u32 %s419_s2, 4  ;;  %s346_s18 = smov [#allocation2]   ;;  %s21_s17 = int_to_ptr.hbm [resolvable:$true] %s20_s17 }
   0x2   :  { %s22_s19 = sshll.u32 %s346_s18, 4  ;;  %s347_s20 = smov 128   ;;  %s23_s19 = int_to_ptr.vmem [resolvable:$true] %s22_s19 }
   0x3   :  { %s348_s21 = smov 8  }
   0x4   :  { %28 = dma.hbm_to_vmem [thread:$0]  %s21_s17, 2688, %s23_s19, [#allocation3], %s347_s20, %s347_s20, %s348_s21  }
   0x5   :  { %342 = dma.done.wait [#allocation3], 2688  }
   0x6   :  { %343 = vsyncadd [#allocation3], 4294964608  ;;  %v385_v0 = vld [vmem:[%s418_s1] sm:$0x3]  ;;  %v40_v1 = vld [vmem:[#allocation2 + $0x28] sm:$0xff]  ;;  %s349_s24 = smov 16  }
   0x7   :  { %v39_v2 = vld [vmem:[#allocation2 + $0x20] sm:$0xff]  ;;  %43 = vrot.lane.b32.xlu0 %v385_v0, %s349_s24  ;;  %63 = vmatpush.msra.mxu0 %v40_v1  ;;  %v38_v3 = vld [vmem:[#allocation2 + $0x18] sm:$0xff]  ;;  %s350_s2 = smov 96   ;;  %v37_v4 = vld [vmem:[#allocation2 + $0x10] sm:$0xff]  ;;  %vm46_vm0 = vcmask 130048   ;;  %vm49_vm1 = vcmask 392192  }
   0x8   :  { %93 = vrot.lane.b32.xlu1 %v385_v0, %s350_s2  ;;  %v36_v5 = vld [vmem:[#allocation2 + $0x8] sm:$0xff]  ;;  %v35_v6 = vld [vmem:[#allocation2] sm:$0xff]  ;;  %v275_v10 = vld [vmem:[#allocation2 + $0x30] ss:$0 sm:$0xff]  ;;  %s351_s26 = smov 64   ;;  %vm126_vm6 = vcmask 261120  }
   0x9   :  { %64 = vmatpush.msra.mxu0 %v39_v2  ;;  %v33_v7 = vld [vmem:[%s417_s0] sm:$0x3]  ;;  %s352_s0 = smov 32   ;;  %v120_v34 = vld [vmem:[#allocation2 + $0x70] sm:$0xff]  ;;  %v119_v35 = vld [vmem:[#allocation2 + $0x68] sm:$0xff]  ;;  %vm129_vm7 = vcmask 523264  }
   0xa   :  { %141 = vmatpush.msra.mxu1 %v120_v34  ;;  %v118_v36 = vld [vmem:[#allocation2 + $0x60] sm:$0xff]  ;;  %v117_v37 = vld [vmem:[#allocation2 + $0x58] sm:$0xff]  ;;  %v116_v38 = vld [vmem:[#allocation2 + $0x50] sm:$0xff]  ;;  %vm207_vm12 = vcmask 785408   ;;  %s353_s29 = smov [#allocation5]   ;;  %s248_s7 = sshll.u32 %s420_s3, 4  ;;  %s249_s7 = int_to_ptr.hbm [resolvable:$true] %s248_s7 }
   0xb   :  { %65 = vmatpush.msra.mxu0 %v38_v3  ;;  %v115_v39 = vld [vmem:[#allocation2 + $0x48] sm:$0xff]  ;;  %v114_v40 = vld [vmem:[#allocation2 + $0x40] sm:$0xff]  ;;  %v113_v43 = vld [vmem:[#allocation2 + $0x38] sm:$0xff]  ;;  %s246_s30 = sshll.u32 %s353_s29, 4  ;;  %s247_s30 = int_to_ptr.vmem [resolvable:$true] %s246_s30 }
   0xc   :  { %142 = vmatpush.msra.mxu1 %v119_v35  ;;  %v276_v46 = vld [vmem:[#allocation2 + $0x78] ss:$0 sm:$0xff] }
   0xd   :  { %66 = vmatpush.msra.mxu0 %v37_v4 }
   0xe   :  { %143 = vmatpush.msra.mxu1 %v118_v36 }
   0xf   :  { %67 = vmatpush.msra.mxu0 %v36_v5 }
  0x10   :  { %144 = vmatpush.msra.mxu1 %v117_v37 }
  0x11   :  { %68 = vmatpush.msra.mxu0 %v35_v6 }
  0x12   :  { %145 = vmatpush.msra.mxu1 %v116_v38 }
  0x14   :  { %146 = vmatpush.msra.mxu1 %v115_v39 }
  0x16   :  { %147 = vmatpush.msra.mxu1 %v114_v40 }
  0x18   :  { %148 = vmatpush.msra.mxu1 %v113_v43 }
  0x79   :  { %v44_v8 = vpop.permute.xlu0 %43 }
  0x7a   :  { %v47_v9 = vsel %vm46_vm0, %v33_v7, %v44_v8  ;;  %v94_v29 = vpop.permute.xlu1 %93  ;;  %v213_v8 = vld [vmem:[#allocation2 + $0x98] sm:$0xff] }
  0x7b   :  { %262 = vmatmul.msk.f32.vlgmr.msra.gmra.mxu0 %vm49_vm1, %v47_v9  ;;  %v212_v9 = vld [vmem:[#allocation2 + $0x90] sm:$0xff]  ;;  %232 = vmatpush.msra.mxu2 %v213_v8 }
  0x7d   :  { %233 = vmatpush.msra.mxu2 %v212_v9 }
  0xf8   :  { %v70_v11 = vpop.f32.mrf.mxu0 }
  0xf9   :  { %v71_v12 = vadd.f32 %v275_v10, %v70_v11  ;;  %v211_v10 = vld [vmem:[#allocation2 + $0x88] sm:$0xff]  ;;  %v210_v11 = vld [vmem:[#allocation2 + $0x80] sm:$0xff] }
  0xfa   :  { %234 = vmatpush.msra.mxu2 %v211_v10 }
  0xfb   :  { %278 = vtanh.f32 %v71_v12  ;;  %v263_v14 = vmul.f32 -1.442695, %v71_v12 }
  0xfc   :  { %235 = vmatpush.msra.mxu2 %v210_v11 }
  0xfd   :  { %280 = vpow2.f32 %v263_v14 }
 0x101   :  { %v279_v13 = vpop.eup %278 }
 0x102   :  { %98 = vrot.lane.b32.xlu0 %v279_v13, %s351_s26 }
 0x103   :  { %v281_v15 = vpop.eup %280 }
 0x104   :  { %v76_v16 = vadd.f32 1.0, %v281_v15 }
 0x106   :  { %282 = vrcp.f32 %v76_v16  ;;  %v88_v22 = vand.u32 2147483648, %v76_v16  ;;  %vm82_vm3 = vweird.f32 %v76_v16  ;;  %v86_v23 = vand.u32 2147483647, %v76_v16 }
 0x108   :  { %v89_v25 = vor.u32 1.1754944e-38, %v88_v22  ;;  %vm87_vm5 = vcmp.eq.f32.partialorder %v86_v23, 8.507059e+37 }
 0x10c   :  { %v283_v17 = vpop.eup %282 }
 0x10d   :  { %v78_v18 = vmul.f32 %v283_v17, %v76_v16  ;;  %vm83_vm2 = vweird.f32 %v283_v17 }
 0x10e   :  { %vm84_vm4 = vmor %vm82_vm3, %vm83_vm2 }
 0x10f   :  { %v79_v19 = vsub.f32 1.0, %v78_v18 }
 0x111   :  { %v80_v20 = vmul.f32 %v283_v17, %v79_v19  ;;  %v277_v19 = vld [vmem:[#allocation2 + $0xa0] ss:$0 sm:$0xff] }
 0x113   :  { %v81_v21 = vadd.f32 %v283_v17, %v80_v20 }
 0x115   :  { %v85_v24 = vsel %vm84_vm4, %v283_v17, %v81_v21 }
 0x116   :  { %v90_v26 = vsel %vm87_vm5, %v89_v25, %v85_v24 }
 0x117   :  { %v96_v30 = vmul.f32 %v94_v29, %v90_v26 }
 0x174   :  { %v99_v27 = vpop.permute.xlu0 %98 }
 0x175   :  { %v101_v28 = vmul.f32 %v99_v27, %v90_v26 }
 0x177   :  { %103 = vrot.lane.b32.xlu1 %v101_v28, %s352_s0 }
 0x17f   :  { %173 = vrot.lane.b32.xlu1 %v385_v0, %s351_s26 }
 0x1e9   :  { %v104_v31 = vpop.permute.xlu1 %103 }
 0x1ea   :  { %v106_v32 = vadd.f32 %v104_v31, %v96_v30 }
 0x1ec   :  { %284 = vtanh.f32 %v106_v32 }
 0x1f1   :  { %v174_v1 = vpop.permute.xlu1 %173 }
 0x1f2   :  { %v285_v33 = vpop.eup %284 }
 0x1f3   :  { %109 = vrot.lane.b32.xlu2 %v285_v33, %s351_s26 }
 0x24d   :  { %v110_v41 = vpop.permute.xlu2 %109 }
 0x24e   :  { %v112_v42 = vmul.f32 %v110_v41, %v90_v26 }
 0x250   :  { %123 = vrot.lane.b32.xlu2 %v112_v42, %s352_s0 }
 0x2aa   :  { %v124_v44 = vpop.permute.xlu2 %123 }
 0x2ab   :  { %v127_v45 = vsel %vm126_vm6, %v124_v44, %v385_v0 }
 0x2ac   :  { %264 = vmatmul.msk.f32.vlgmr.msra.gmra.mxu1 %vm129_vm7, %v127_v45 }
 0x329   :  { %v150_v47 = vpop.f32.mrf.mxu1 }
 0x32a   :  { %v151_v48 = vadd.f32 %v276_v46, %v150_v47 }
 0x32c   :  { %286 = vtanh.f32 %v151_v48  ;;  %v265_v50 = vmul.f32 -1.442695, %v151_v48 }
 0x32e   :  { %288 = vpow2.f32 %v265_v50 }
 0x332   :  { %v287_v49 = vpop.eup %286 }
 0x333   :  { %178 = vrot.lane.b32.xlu0 %v287_v49, %s351_s26 }
 0x334   :  { %v289_v51 = vpop.eup %288 }
 0x335   :  { %v156_v52 = vadd.f32 1.0, %v289_v51 }
 0x337   :  { %290 = vrcp.f32 %v156_v52  ;;  %v168_v58 = vand.u32 2147483648, %v156_v52  ;;  %vm162_vm9 = vweird.f32 %v156_v52  ;;  %v166_v59 = vand.u32 2147483647, %v156_v52 }
 0x339   :  { %v169_v61 = vor.u32 1.1754944e-38, %v168_v58  ;;  %vm167_vm11 = vcmp.eq.f32.partialorder %v166_v59, 8.507059e+37 }
 0x33d   :  { %v291_v53 = vpop.eup %290 }
 0x33e   :  { %v158_v54 = vmul.f32 %v291_v53, %v156_v52  ;;  %vm163_vm8 = vweird.f32 %v291_v53 }
 0x33f   :  { %vm164_vm10 = vmor %vm162_vm9, %vm163_vm8 }
 0x340   :  { %v159_v55 = vsub.f32 1.0, %v158_v54 }
 0x342   :  { %v160_v56 = vmul.f32 %v291_v53, %v159_v55 }
 0x344   :  { %v161_v57 = vadd.f32 %v291_v53, %v160_v56 }
 0x346   :  { %v165_v60 = vsel %vm164_vm10, %v291_v53, %v161_v57 }
 0x347   :  { %v170_v62 = vsel %vm167_vm11, %v169_v61, %v165_v60 }
 0x348   :  { %v176_v2 = vmul.f32 %v174_v1, %v170_v62 }
 0x3a5   :  { %v179_v63 = vpop.permute.xlu0 %178 }
 0x3a6   :  { %v181_v0 = vmul.f32 %v179_v63, %v170_v62 }
 0x3a8   :  { %183 = vrot.lane.b32.xlu2 %v181_v0, %s352_s0 }
 0x402   :  { %v184_v3 = vpop.permute.xlu2 %183 }
 0x403   :  { %v186_v4 = vadd.f32 %v184_v3, %v176_v2 }
 0x405   :  { %292 = vtanh.f32 %v186_v4 }
 0x40b   :  { %v293_v5 = vpop.eup %292 }
 0x40c   :  { %189 = vrot.lane.b32.xlu0 %v293_v5, %s351_s26 }
 0x414   :  { %198 = vrot.lane.b32.xlu0 %v106_v32, %s352_s0 }
 0x47e   :  { %v190_v6 = vpop.permute.xlu0 %189 }
 0x47f   :  { %v192_v7 = vmul.f32 %v190_v6, %v170_v62 }
 0x481   :  { %194 = vrot.lane.b32.xlu2 %v192_v7, %s351_s26  ;;  %216 = vrot.lane.b32.xlu1 %v192_v7, %s352_s0 }
 0x486   :  { %v199_v15 = vpop.permute.xlu0 %198 }
 0x489   :  { %202 = vrot.lane.b32.xlu1 %v186_v4, %s351_s26 }
 0x4db   :  { %v195_v13 = vpop.permute.xlu2 %194 }
 0x4dc   :  { %v205_v14 = vsel %vm126_vm6, %v124_v44, %v195_v13 }
 0x4dd   :  { %v206_v17 = vsel %vm129_vm7, %v205_v14, %v199_v15 }
 0x4f3   :  { %v217_v12 = vpop.permute.xlu1 %216 }
 0x4f4   :  { %266 = vmatmul.msk.f32.vlgmr.msra.gmra.mxu2 %vm126_vm6, %v217_v12 }
 0x4fb   :  { %v203_v16 = vpop.permute.xlu1 %202 }
 0x4fc   :  { %v208_v18 = vsel %vm207_vm12, %v206_v17, %v203_v16 }
 0x4fd   :  { %209 = vst [vmem:[%s421_s4] sm:$0x3] %v208_v18 }
 0x577   :  { %v237_v20 = vpop.f32.mrf.mxu2 }
 0x578   :  { %v238_v21 = vadd.f32 %v277_v19, %v237_v20 }
 0x57a   :  { %240 = vst [vmem:[#allocation5] sm:$0x3] %v238_v21 }
 0x57b   :  { %251 = dma.vmem_to_hbm [thread:$0]  %s247_s30, 32, %s249_s7, [#allocation4]  }
 0x57c   :  { %344 = dma.done.wait [#allocation4], 32  }
 0x57d   :  { %345 = vsyncadd [#allocation4], 4294967264 }
 0x57e   :  { %260 = vsyncpa [#allocation3], 1 }
 0x57f   :  { %261 = vsyncpa [#allocation4], 1 }

</bundles_post_ra>
